<compile_context>
chip_gen: v5e
topology: v5e:2x2
jax: 0.10.0
libtpu: 0.0.40
codegen_flags: <defaults>
</compile_context>

<pallas_src>
import math
import functools

import jax
import jax.numpy as jnp
from jax import lax
from jax.experimental import pallas as pl
from jax.experimental.pallas import tpu as pltpu


def _bf16_matmul_t(x, w):
    """y = x @ w.T with bf16 MXU operands, f32 accumulation.

    x: (M, K), w: (N, K) (PyTorch nn.Linear weight layout). Returns (M, N) f32.
    """
    return lax.dot_general(
        x.astype(jnp.bfloat16), w.astype(jnp.bfloat16),
        dimension_numbers=(((1,), (1,)), ((), ())),
        preferred_element_type=jnp.float32,
    )


def qkv_proj_kernel(xq_ref, xk_ref, xv_ref,
                    wq_ref, bq_ref, wk_ref, bk_ref, wv_ref, bv_ref,
                    q_ref, k_ref, v_ref, *, scale):
    q = _bf16_matmul_t(xq_ref[...], wq_ref[...]) + bq_ref[...]
    k = _bf16_matmul_t(xk_ref[...], wk_ref[...]) + bk_ref[...]
    v = _bf16_matmul_t(xv_ref[...], wv_ref[...]) + bv_ref[...]
    q_ref[...] = (q * scale).astype(q_ref.dtype)   # 1/sqrt(d_head) folded in
    k_ref[...] = k.astype(k_ref.dtype)
    v_ref[...] = v.astype(v_ref.dtype)


def attn_kernel(q_ref, k_ref, v_ref, bias_ref, o_ref):
    # q/k/v: (S, dh) bf16 for one (batch, head); bias: (1, S) additive f32.
    scores = lax.dot_general(                       # (S_q, S_k), f32 accumulate
        q_ref[...], k_ref[...],
        dimension_numbers=(((1,), (1,)), ((), ())),
        preferred_element_type=jnp.float32,
    )
    scores = scores + bias_ref[...]                 # additive key mask (one add)
    m = jnp.max(scores, axis=-1, keepdims=True)
    e = jnp.exp(scores - m)                         # unnormalized probs, f32
    denom = jnp.sum(e, axis=-1, keepdims=True)
    # TODO(synk): attention dropout (p=0.1) is identity in eval mode; omitted.
    ctx = jnp.dot(e.astype(jnp.bfloat16), v_ref[...],
                  preferred_element_type=jnp.float32)          # (S, dh), f32
    ctx = ctx * pl.reciprocal(denom, approx=True)  # deferred softmax normalization
    o_ref[...] = ctx.astype(o_ref.dtype)


def out_proj_kernel(x_ref, w_ref, b_ref, o_ref):
    y = _bf16_matmul_t(x_ref[...], w_ref[...]) + b_ref[...]
    o_ref[...] = y.astype(o_ref.dtype)


def _token_tile(m):
    """Largest token-tile (multiple of 8, <=256) that evenly divides m."""
    for t in (256, 128, 64, 32, 16, 8):
        if m % t == 0:
            return t
    return m


def multi_head_self_attention(query, key, value, mask, params, n_heads):
    """query/key/value: (bs, S, D) f32; mask: (bs, S), nonzero = attend."""
    bs, S, D = query.shape
    assert D % n_heads == 0
    dh = D // n_heads
    M = bs * S

    wq, bq, wk, bk, wv, bv, wo, bo = params
    # Weights as bf16 MXU operands (half the VMEM footprint); biases stay f32.
    wq_b, wk_b, wv_b, wo_b = (w.astype(jnp.bfloat16) for w in (wq, wk, wv, wo))
    bq2, bk2, bv2, bo2 = (b.reshape(1, D).astype(jnp.float32)
                          for b in (bq, bk, bv, bo))

    tm = _token_tile(M)
    n_m = M // tm
    x_spec = pl.BlockSpec((tm, D), lambda i: (i, 0))
    w_spec = pl.BlockSpec((D, D), lambda i: (0, 0))   # constant -> stays resident
    b_spec = pl.BlockSpec((1, D), lambda i: (0, 0))

    xq = query.reshape(M, D)
    xk = key.reshape(M, D)
    xv = value.reshape(M, D)

    # ---- 1. fused Q/K/V projections: one big token-dim GEMM ----
    q2d, k2d, v2d = pl.pallas_call(
        functools.partial(qkv_proj_kernel, scale=1.0 / math.sqrt(dh)),
        out_shape=(jax.ShapeDtypeStruct((M, D), jnp.bfloat16),) * 3,
        grid_spec=pltpu.PrefetchScalarGridSpec(
            num_scalar_prefetch=0,
            grid=(n_m,),
            in_specs=[x_spec, x_spec, x_spec,
                      w_spec, b_spec, w_spec, b_spec, w_spec, b_spec],
            out_specs=(x_spec, x_spec, x_spec),
        ),
        compiler_params=pltpu.CompilerParams(
            dimension_semantics=("parallel",)),
    )(xq, xk, xv, wq_b, bq2, wk_b, bk2, wv_b, bv2)

    # ---- 2. attention, one (batch, head) pair per grid step ----
    def split_heads(x2d):                        # (M, D) -> (bs, H, S, dh)
        return x2d.reshape(bs, S, n_heads, dh).transpose(0, 2, 1, 3)

    qh, kh, vh = (split_heads(x) for x in (q2d, k2d, v2d))
    # Additive key-mask bias, computed once (not per head / per tile).
    bias = jnp.where(mask == 0, jnp.finfo(jnp.float32).min, 0.0)
    bias = bias.astype(jnp.float32).reshape(bs, 1, S)

    head_spec = pl.BlockSpec((None, None, S, dh), lambda b, h: (b, h, 0, 0))
    bias_spec = pl.BlockSpec((None, 1, S), lambda b, h: (b, 0, 0))

    ctx = pl.pallas_call(
        attn_kernel,
        out_shape=jax.ShapeDtypeStruct((bs, n_heads, S, dh), jnp.bfloat16),
        grid_spec=pltpu.PrefetchScalarGridSpec(
            num_scalar_prefetch=0,
            grid=(bs, n_heads),
            in_specs=[head_spec, head_spec, head_spec, bias_spec],
            out_specs=head_spec,
        ),
        compiler_params=pltpu.CompilerParams(
            dimension_semantics=("parallel", "parallel")),
    )(qh, kh, vh, bias)

    # ---- 3. output projection (token-dim GEMM) ----
    ctx2d = ctx.transpose(0, 2, 1, 3).reshape(M, D)        # == unshape()
    out2d = pl.pallas_call(
        out_proj_kernel,
        out_shape=jax.ShapeDtypeStruct((M, D), query.dtype),
        grid_spec=pltpu.PrefetchScalarGridSpec(
            num_scalar_prefetch=0,
            grid=(n_m,),
            in_specs=[x_spec, w_spec, b_spec],
            out_specs=x_spec,
        ),
        compiler_params=pltpu.CompilerParams(
            dimension_semantics=("parallel",)),
    )(ctx2d, wo_b, bo2)

    return out2d.reshape(bs, S, D)


def reference_mhsa(query, key, value, mask, params, n_heads):
    """Plain-JAX f32 reference mirroring the PyTorch forward (eval mode)."""
    wq, bq, wk, bk, wv, bv, wo, bo = params
    bs, S, D = query.shape
    dh = D // n_heads

    def shape(x):
        return x.reshape(bs, S, n_heads, dh).transpose(0, 2, 1, 3)

    q = shape(query @ wq.T + bq) / math.sqrt(dh)
    k = shape(key @ wk.T + bk)
    v = shape(value @ wv.T + bv)
    scores = jnp.einsum('bhqd,bhkd->bhqk', q, k)
    m = (mask == 0).reshape(bs, 1, 1, S)
    scores = jnp.where(m, jnp.finfo(scores.dtype).min, scores)
    weights = jax.nn.softmax(scores, axis=-1)
    ctx = jnp.einsum('bhqk,bhkd->bhqd', weights, v)
    ctx = ctx.transpose(0, 2, 1, 3).reshape(bs, S, D)
    return ctx @ wo.T + bo


if __name__ == "__main__":
    bs, S, dim, n_heads = 2, 8, 32, 4

    root = jax.random.PRNGKey(0)
    keys = jax.random.split(root, 12)

    def lin_init(kw, kb, out_f, in_f):
        bound = 1.0 / math.sqrt(in_f)
        w = jax.random.uniform(kw, (out_f, in_f), jnp.float32, -bound, bound)
        b = jax.random.uniform(kb, (out_f,), jnp.float32, -bound, bound)
        return w, b

    wq, bq = lin_init(keys[0], keys[1], dim, dim)
    wk, bk = lin_init(keys[2], keys[3], dim, dim)
    wv, bv = lin_init(keys[4], keys[5], dim, dim)
    wo, bo = lin_init(keys[6], keys[7], dim, dim)
    params = (wq, bq, wk, bk, wv, bv, wo, bo)

    query = jax.random.normal(keys[8], (bs, S, dim), jnp.float32)
    key = jax.random.normal(keys[9], (bs, S, dim), jnp.float32)
    value = jax.random.normal(keys[10], (bs, S, dim), jnp.float32)
    # mask: 1 = attend, 0 = masked; mask out a couple of trailing key positions.
    mask = jnp.ones((bs, S), jnp.int32).at[:, -2:].set(0)

    out = multi_head_self_attention(query, key, value, mask, params, n_heads)
    out = jax.block_until_ready(out)

    ref = reference_mhsa(query, key, value, mask, params, n_heads)
    assert out.shape == (bs, S, dim)
    # Kernel uses bf16 MXU operands (f32 accumulation / f32 softmax), so
    # compare against the pure-f32 reference at a bf16-appropriate tolerance.
    assert jnp.allclose(out, ref, atol=5e-2, rtol=5e-2), "mismatch vs reference"

    print("KERNEL_OK")
</pallas_src>

<mosaic_0001>
module attributes {stable_mosaic.version = 11 : i64} {
  func.func @qkv_proj_kernel(%arg0: i32, %arg1: memref<16x32xf32, #tpu.memory_space<vmem>>, %arg2: memref<16x32xf32, #tpu.memory_space<vmem>>, %arg3: memref<16x32xf32, #tpu.memory_space<vmem>>, %arg4: memref<32x32xbf16, #tpu.memory_space<vmem>>, %arg5: memref<1x32xf32, #tpu.memory_space<vmem>>, %arg6: memref<32x32xbf16, #tpu.memory_space<vmem>>, %arg7: memref<1x32xf32, #tpu.memory_space<vmem>>, %arg8: memref<32x32xbf16, #tpu.memory_space<vmem>>, %arg9: memref<1x32xf32, #tpu.memory_space<vmem>>, %arg10: memref<16x32xbf16, #tpu.memory_space<vmem>>, %arg11: memref<16x32xbf16, #tpu.memory_space<vmem>>, %arg12: memref<16x32xbf16, #tpu.memory_space<vmem>>) attributes {dimension_semantics = [#tpu.dimension_semantics<parallel>], iteration_bounds = array<i64: 1>, scalar_prefetch = 0 : i64, scratch_operands = 0 : i64, tpu.core_type = #tpu.core_type<tc>, window_params = [{transform_indices = @transform_0, window_bounds = array<i64: 16, 32>}, {transform_indices = @transform_1, window_bounds = array<i64: 16, 32>}, {transform_indices = @transform_2, window_bounds = array<i64: 16, 32>}, {pipeline_mode = #tpu.pipeline_mode<synchronous>, transform_indices = @transform_3, window_bounds = array<i64: 32, 32>}, {pipeline_mode = #tpu.pipeline_mode<synchronous>, transform_indices = @transform_4, window_bounds = array<i64: 1, 32>}, {pipeline_mode = #tpu.pipeline_mode<synchronous>, transform_indices = @transform_5, window_bounds = array<i64: 32, 32>}, {pipeline_mode = #tpu.pipeline_mode<synchronous>, transform_indices = @transform_6, window_bounds = array<i64: 1, 32>}, {pipeline_mode = #tpu.pipeline_mode<synchronous>, transform_indices = @transform_7, window_bounds = array<i64: 32, 32>}, {pipeline_mode = #tpu.pipeline_mode<synchronous>, transform_indices = @transform_8, window_bounds = array<i64: 1, 32>}, {transform_indices = @transform_9, window_bounds = array<i64: 16, 32>}, {transform_indices = @transform_10, window_bounds = array<i64: 16, 32>}, {transform_indices = @transform_11, window_bounds = array<i64: 16, 32>}]} {
    %c0 = arith.constant 0 : index
    %c0_0 = arith.constant 0 : index
    %0 = vector.load %arg1[%c0, %c0_0] : memref<16x32xf32, #tpu.memory_space<vmem>>, vector<16x32xf32>
    %c0_1 = arith.constant 0 : index
    %c0_2 = arith.constant 0 : index
    %1 = vector.load %arg4[%c0_1, %c0_2] : memref<32x32xbf16, #tpu.memory_space<vmem>>, vector<32x32xbf16>
    %2 = arith.truncf %0 : vector<16x32xf32> to vector<16x32xbf16>
    %cst = arith.constant dense<0.000000e+00> : vector<16x32xf32>
    %3 = tpu.matmul %2, %1, %cst {dimension_numbers = #tpu.dot_dimension_numbers<[1], [1], [0], [0], [0, 0, 1, 0], [], []>} : vector<16x32xbf16>, vector<32x32xbf16>, vector<16x32xf32> -> vector<16x32xf32>
    %c0_3 = arith.constant 0 : index
    %c0_4 = arith.constant 0 : index
    %4 = vector.load %arg5[%c0_3, %c0_4] : memref<1x32xf32, #tpu.memory_space<vmem>>, vector<1x32xf32>
    %5 = vector.broadcast %4 : vector<1x32xf32> to vector<16x32xf32>
    %6 = arith.addf %3, %5 : vector<16x32xf32>
    %c0_5 = arith.constant 0 : index
    %c0_6 = arith.constant 0 : index
    %7 = vector.load %arg2[%c0_5, %c0_6] : memref<16x32xf32, #tpu.memory_space<vmem>>, vector<16x32xf32>
    %c0_7 = arith.constant 0 : index
    %c0_8 = arith.constant 0 : index
    %8 = vector.load %arg6[%c0_7, %c0_8] : memref<32x32xbf16, #tpu.memory_space<vmem>>, vector<32x32xbf16>
    %9 = arith.truncf %7 : vector<16x32xf32> to vector<16x32xbf16>
    %cst_9 = arith.constant dense<0.000000e+00> : vector<16x32xf32>
    %10 = tpu.matmul %9, %8, %cst_9 {dimension_numbers = #tpu.dot_dimension_numbers<[1], [1], [0], [0], [0, 0, 1, 0], [], []>} : vector<16x32xbf16>, vector<32x32xbf16>, vector<16x32xf32> -> vector<16x32xf32>
    %c0_10 = arith.constant 0 : index
    %c0_11 = arith.constant 0 : index
    %11 = vector.load %arg7[%c0_10, %c0_11] : memref<1x32xf32, #tpu.memory_space<vmem>>, vector<1x32xf32>
    %12 = vector.broadcast %11 : vector<1x32xf32> to vector<16x32xf32>
    %13 = arith.addf %10, %12 : vector<16x32xf32>
    %c0_12 = arith.constant 0 : index
    %c0_13 = arith.constant 0 : index
    %14 = vector.load %arg3[%c0_12, %c0_13] : memref<16x32xf32, #tpu.memory_space<vmem>>, vector<16x32xf32>
    %c0_14 = arith.constant 0 : index
    %c0_15 = arith.constant 0 : index
    %15 = vector.load %arg8[%c0_14, %c0_15] : memref<32x32xbf16, #tpu.memory_space<vmem>>, vector<32x32xbf16>
    %16 = arith.truncf %14 : vector<16x32xf32> to vector<16x32xbf16>
    %cst_16 = arith.constant dense<0.000000e+00> : vector<16x32xf32>
    %17 = tpu.matmul %16, %15, %cst_16 {dimension_numbers = #tpu.dot_dimension_numbers<[1], [1], [0], [0], [0, 0, 1, 0], [], []>} : vector<16x32xbf16>, vector<32x32xbf16>, vector<16x32xf32> -> vector<16x32xf32>
    %c0_17 = arith.constant 0 : index
    %c0_18 = arith.constant 0 : index
    %18 = vector.load %arg9[%c0_17, %c0_18] : memref<1x32xf32, #tpu.memory_space<vmem>>, vector<1x32xf32>
    %19 = vector.broadcast %18 : vector<1x32xf32> to vector<16x32xf32>
    %20 = arith.addf %17, %19 : vector<16x32xf32>
    %cst_19 = arith.constant 0.353553385 : f32
    %21 = vector.broadcast %cst_19 : f32 to vector<16x32xf32>
    %22 = arith.mulf %6, %21 : vector<16x32xf32>
    %23 = arith.truncf %22 : vector<16x32xf32> to vector<16x32xbf16>
    %c0_20 = arith.constant 0 : index
    %c0_21 = arith.constant 0 : index
    %24 = vector.load %arg10[%c0_20, %c0_21] : memref<16x32xbf16, #tpu.memory_space<vmem>>, vector<16x32xbf16>
    tpu.vector_store %arg10[%c0_20, %c0_21], %23 {strides = array<i32>} : memref<16x32xbf16, #tpu.memory_space<vmem>>, vector<16x32xbf16>,
    %25 = arith.truncf %13 : vector<16x32xf32> to vector<16x32xbf16>
    %c0_22 = arith.constant 0 : index
    %c0_23 = arith.constant 0 : index
    %26 = vector.load %arg11[%c0_22, %c0_23] : memref<16x32xbf16, #tpu.memory_space<vmem>>, vector<16x32xbf16>
    tpu.vector_store %arg11[%c0_22, %c0_23], %25 {strides = array<i32>} : memref<16x32xbf16, #tpu.memory_space<vmem>>, vector<16x32xbf16>,
    %27 = arith.truncf %20 : vector<16x32xf32> to vector<16x32xbf16>
    %c0_24 = arith.constant 0 : index
    %c0_25 = arith.constant 0 : index
    %28 = vector.load %arg12[%c0_24, %c0_25] : memref<16x32xbf16, #tpu.memory_space<vmem>>, vector<16x32xbf16>
    tpu.vector_store %arg12[%c0_24, %c0_25], %27 {strides = array<i32>} : memref<16x32xbf16, #tpu.memory_space<vmem>>, vector<16x32xbf16>,
    return
  }
  func.func @transform_0(%arg0: i32) -> (i32, i32) {
    %c0_i32 = arith.constant 0 : i32
    %c0_i32_0 = arith.constant 0 : i32
    return %arg0, %c0_i32 : i32, i32
  }
  func.func @transform_1(%arg0: i32) -> (i32, i32) {
    %c0_i32 = arith.constant 0 : i32
    %c0_i32_0 = arith.constant 0 : i32
    return %arg0, %c0_i32 : i32, i32
  }
  func.func @transform_2(%arg0: i32) -> (i32, i32) {
    %c0_i32 = arith.constant 0 : i32
    %c0_i32_0 = arith.constant 0 : i32
    return %arg0, %c0_i32 : i32, i32
  }
  func.func @transform_3(%arg0: i32) -> (i32, i32) {
    %c0_i32 = arith.constant 0 : i32
    %c0_i32_0 = arith.constant 0 : i32
    %c0_i32_1 = arith.constant 0 : i32
    return %c0_i32, %c0_i32_0 : i32, i32
  }
  func.func @transform_4(%arg0: i32) -> (i32, i32) {
    %c0_i32 = arith.constant 0 : i32
    %c0_i32_0 = arith.constant 0 : i32
    %c0_i32_1 = arith.constant 0 : i32
    return %c0_i32, %c0_i32_0 : i32, i32
  }
  func.func @transform_5(%arg0: i32) -> (i32, i32) {
    %c0_i32 = arith.constant 0 : i32
    %c0_i32_0 = arith.constant 0 : i32
    %c0_i32_1 = arith.constant 0 : i32
    return %c0_i32, %c0_i32_0 : i32, i32
  }
  func.func @transform_6(%arg0: i32) -> (i32, i32) {
    %c0_i32 = arith.constant 0 : i32
    %c0_i32_0 = arith.constant 0 : i32
    %c0_i32_1 = arith.constant 0 : i32
    return %c0_i32, %c0_i32_0 : i32, i32
  }
  func.func @transform_7(%arg0: i32) -> (i32, i32) {
    %c0_i32 = arith.constant 0 : i32
    %c0_i32_0 = arith.constant 0 : i32
    %c0_i32_1 = arith.constant 0 : i32
    return %c0_i32, %c0_i32_0 : i32, i32
  }
  func.func @transform_8(%arg0: i32) -> (i32, i32) {
    %c0_i32 = arith.constant 0 : i32
    %c0_i32_0 = arith.constant 0 : i32
    %c0_i32_1 = arith.constant 0 : i32
    return %c0_i32, %c0_i32_0 : i32, i32
  }
  func.func @transform_9(%arg0: i32) -> (i32, i32) {
    %c0_i32 = arith.constant 0 : i32
    %c0_i32_0 = arith.constant 0 : i32
    return %arg0, %c0_i32 : i32, i32
  }
  func.func @transform_10(%arg0: i32) -> (i32, i32) {
    %c0_i32 = arith.constant 0 : i32
    %c0_i32_0 = arith.constant 0 : i32
    return %arg0, %c0_i32 : i32, i32
  }
  func.func @transform_11(%arg0: i32) -> (i32, i32) {
    %c0_i32 = arith.constant 0 : i32
    %c0_i32_0 = arith.constant 0 : i32
    return %arg0, %c0_i32 : i32, i32
  }
}

</mosaic_0001>

<bundles_post_ra>
// kernel: tpu_custom_call.1
= control target key start
LH: loop header
LB: loop body
LE: loop exit
PB: predicated region body
PF: predicated region fallthrough
CT: control target
= control target key end

     0   :  { %17 = vsyncpa [#allocation3], 0  ;;  %s756_s0 = inlined_call_operand.hbm [shape: f32[16,32], index: 0, kind: input, shape index: {}]   ;;  %s757_s1 = inlined_call_operand.hbm [shape: f32[16,32], index: 1, kind: input, shape index: {}]   ;;  %s758_s2 = inlined_call_operand.hbm [shape: f32[16,32], index: 2, kind: input, shape index: {}]   ;;  %s759_s3 = inlined_call_operand.hbm [shape: bf16[32,32], index: 3, kind: input, shape index: {}]   ;;  %s760_s4 = inlined_call_operand.vmem [shape: f32[1,32], index: 4, kind: input, shape index: {}]   ;;  %s761_s5 = inlined_call_operand.hbm [shape: bf16[32,32], index: 5, kind: input, shape index: {}]   ;;  %s762_s6 = inlined_call_operand.vmem [shape: f32[1,32], index: 6, kind: input, shape index: {}]   ;;  %s763_s7 = inlined_call_operand.hbm [shape: bf16[32,32], index: 7, kind: input, shape index: {}]   ;;  %s764_s8 = inlined_call_operand.vmem [shape: f32[1,32], index: 8, kind: input, shape index: {}]   ;;  %s765_s9 = inlined_call_operand.hbm [shape: bf16[16,32], index: 9, kind: output, shape index: {0}]   ;;  %s766_s10 = inlined_call_operand.hbm [shape: bf16[16,32], index: 10, kind: output, shape index: {1}]   ;;  %s767_s11 = inlined_call_operand.hbm [shape: bf16[16,32], index: 11, kind: output, shape index: {2}]  }
   0x1   :  { %18 = vsyncpa [#allocation6], 0 }
   0x2   :  { %19 = vsyncpa [#allocation9], 0 }
   0x3   :  { %20 = vsyncpa [#allocation12], 0 }
   0x4   :  { %21 = vsyncpa [#allocation4], 0 }
   0x5   :  { %22 = vsyncpa [#allocation15], 0  ;;  %s40_s19 = sshll.u32 %s757_s1, 4  ;;  %s614_s20 = smov [#allocation5]   ;;  %s41_s19 = int_to_ptr.hbm [resolvable:$true] %s40_s19 }
   0x6   :  { %s42_s21 = sshll.u32 %s614_s20, 4  ;;  %s66_s24 = sshll.u32 %s759_s3, 4  ;;  %s43_s21 = int_to_ptr.vmem [resolvable:$true] %s42_s21  ;;  %s67_s24 = int_to_ptr.hbm [resolvable:$true] %s66_s24 }
   0x7   :  { %s615_s25 = smov 128   ;;  %s616_s26 = smov 8  }
   0x8   :  { %48 = dma.hbm_to_vmem [thread:$0]  %s41_s19, 256, %s43_s21, [#allocation6], %s615_s25, %s615_s25, %s616_s26  }
   0x9   :  { %s617_s27 = smov [#allocation8]   ;;  %s618_s29 = smov 64  }
   0xa   :  { %s68_s28 = sshll.u32 %s617_s27, 4  ;;  %s619_s30 = smov 4   ;;  %s69_s28 = int_to_ptr.vmem [resolvable:$true] %s68_s28 }
   0xb   :  { %74 = dma.hbm_to_vmem [thread:$0]  %s67_s24, 256, %s69_s28, [#allocation9], %s618_s29, %s618_s29, %s619_s30  }
   0xc   :  { %s27_s13 = sshll.u32 %s756_s0, 4  ;;  %s620_s14 = smov [#allocation2]   ;;  %s28_s13 = int_to_ptr.hbm [resolvable:$true] %s27_s13 }
   0xd   :  { %s29_s3 = sshll.u32 %s620_s14, 4  ;;  %s53_s17 = sshll.u32 %s758_s2, 4  ;;  %s30_s3 = int_to_ptr.vmem [resolvable:$true] %s29_s3  ;;  %s54_s17 = int_to_ptr.hbm [resolvable:$true] %s53_s17 }
   0xe   :  { %35 = dma.hbm_to_vmem [thread:$0]  %s28_s13, 256, %s30_s3, [#allocation3], %s615_s25, %s615_s25, %s616_s26  }
   0xf   :  { %s621_s18 = smov [#allocation7]   ;;  %s81_s22 = sshll.u32 %s761_s5, 4  ;;  %s82_s22 = int_to_ptr.hbm [resolvable:$true] %s81_s22 }
  0x10   :  { %s55_s19 = sshll.u32 %s621_s18, 4  ;;  %s96_s24 = sshll.u32 %s763_s7, 4  ;;  %s56_s19 = int_to_ptr.vmem [resolvable:$true] %s55_s19  ;;  %s97_s24 = int_to_ptr.hbm [resolvable:$true] %s96_s24 }
  0x11   :  { %61 = dma.hbm_to_vmem [thread:$0]  %s54_s17, 256, %s56_s19, [#allocation6], %s615_s25, %s615_s25, %s616_s26  }
  0x12   :  { %s622_s27 = smov [#allocation10]   ;;  %s623_s2 = smov [#allocation11]  }
  0x13   :  { %s83_s28 = sshll.u32 %s622_s27, 4  ;;  %s98_s1 = sshll.u32 %s623_s2, 4  ;;  %s84_s28 = int_to_ptr.vmem [resolvable:$true] %s83_s28  ;;  %s99_s1 = int_to_ptr.vmem [resolvable:$true] %s98_s1 }
  0x14   :  { %89 = dma.hbm_to_vmem [thread:$0]  %s82_s22, 256, %s84_s28, [#allocation9], %s618_s29, %s618_s29, %s619_s30  }
  0x15   :  { %104 = dma.hbm_to_vmem [thread:$0]  %s97_s24, 256, %s99_s1, [#allocation12], %s618_s29, %s618_s29, %s619_s30  }
  0x16   :  { %602 = dma.done.wait [#allocation3], 256  }
  0x17   :  { %603 = vsyncadd [#allocation3], 4294967040 }
  0x18   :  { %604 = dma.done.wait [#allocation6], 512  }
  0x19   :  { %605 = vsyncadd [#allocation6], 4294966784 }
  0x1a   :  { %606 = dma.done.wait [#allocation9], 512  }
  0x1b   :  { %607 = vsyncadd [#allocation9], 4294966784 }
  0x1c   :  { %608 = dma.done.wait [#allocation12], 256  }
  0x1d   :  { %609 = vsyncadd [#allocation12], 4294967040  ;;  %vm153_vm0 = vcmask 261120   ;;  %v365_v0 = vld [vmem:[#allocation8 + $0x8] sm:$0xff]  ;;  %v367_v1 = vld [vmem:[#allocation10 + $0x8] sm:$0xff]  ;;  %vm269_vm1 = vcmask 257024  }
  0x1e   :  { %v369_v2 = vld [vmem:[#allocation11 + $0x8] sm:$0xff]  ;;  %v161_v3 = vsel %vm153_vm0, %v365_v0, 0  ;;  %v205_v4 = vsel %vm153_vm0, %v367_v1, 0  ;;  %v364_v6 = vld [vmem:[#allocation8] sm:$0xff]  ;;  %v366_v7 = vld [vmem:[#allocation10] sm:$0xff]  ;;  %s299_s15 = sshll.u32 %s766_s10, 4  ;;  %s300_s15 = int_to_ptr.hbm [resolvable:$true] %s299_s15 }
  0x1f   :  { %v249_v5 = vsel %vm153_vm0, %v369_v2, 0  ;;  %169 = vmatpush.bf16.xpose.msra.mxu0 %v161_v3  ;;  %213 = vmatpush.bf16.xpose.msra.mxu1 %v205_v4  ;;  %v368_v8 = vld [vmem:[#allocation11] sm:$0xff]  ;;  %v158_v9 = vsel %vm153_vm0, %v364_v6, 0  ;;  %v202_v10 = vsel %vm153_vm0, %v366_v7, 0  ;;  %v132_v12 = vld [vmem:[#allocation2] sm:$0xff]  ;;  %v133_v13 = vld [vmem:[#allocation2 + $0x8] sm:$0xff] }
  0x20   :  { %257 = vmatpush.bf16.xpose.msra.mxu2 %v249_v5  ;;  %v246_v11 = vsel %vm153_vm0, %v368_v8, 0  ;;  %v177_v14 = vld [vmem:[#allocation5] sm:$0xff]  ;;  %v178_v15 = vld [vmem:[#allocation5 + $0x8] sm:$0xff]  ;;  %v221_v16 = vld [vmem:[#allocation7] sm:$0xff]  ;;  %v138_v18 = vpack.c.bf16 %v133_v13, %v132_v12  ;;  %s625_s16 = smov [#allocation13]   ;;  %s286_s19 = sshll.u32 %s765_s9, 4  ;;  %s287_s19 = int_to_ptr.hbm [resolvable:$true] %s286_s19 }
  0x21   :  { %v222_v17 = vld [vmem:[#allocation7 + $0x8] sm:$0xff]  ;;  %v183_v19 = vpack.c.bf16 %v178_v15, %v177_v14  ;;  %v383_v21 = vld [vmem:[%s760_s4] ss:$0 sm:$0xff]  ;;  %s624_s4 = smov [#allocation14]   ;;  %s626_s10 = smov [#allocation16]  }
  0x22   :  { %v227_v20 = vpack.c.bf16 %v222_v17, %v221_v16  ;;  %v384_v22 = vld [vmem:[%s762_s6] ss:$0 sm:$0xff]  ;;  %s297_s6 = sshll.u32 %s624_s4, 4  ;;  %s310_s9 = sshll.u32 %s626_s10, 4  ;;  %s298_s6 = int_to_ptr.vmem [resolvable:$true] %s297_s6  ;;  %s311_s9 = int_to_ptr.vmem [resolvable:$true] %s310_s9 }
  0x23   :  { %v385_v29 = vld [vmem:[%s764_s8] ss:$0 sm:$0xff]  ;;  %s284_s8 = sshll.u32 %s625_s16, 4  ;;  %s312_s22 = sshll.u32 %s767_s11, 4  ;;  %s285_s8 = int_to_ptr.vmem [resolvable:$true] %s284_s8  ;;  %s313_s22 = int_to_ptr.hbm [resolvable:$true] %s312_s22 }
  0x27   :  { %170 = vmatpush.bf16.xpose.msra.mxu0 %v158_v9  ;;  %214 = vmatpush.bf16.xpose.msra.mxu1 %v202_v10 }
  0x28   :  { %258 = vmatpush.bf16.xpose.msra.mxu2 %v246_v11 }
  0x2e   :  { %345 = vmatmul.msk.bf16.vlgmr.msra.gmra.mxu0 %vm153_vm0, %v138_v18  ;;  %354 = vmatmul.msk.bf16.vlgmr.msra.gmra.mxu1 %vm153_vm0, %v183_v19 }
  0x2f   :  { %363 = vmatmul.msk.bf16.vlgmr.msra.gmra.mxu2 %vm153_vm0, %v227_v20 }
  0xab   :  { %v172_v23 = vpop.f32.mrf.mxu0  ;;  %v216_v24 = vpop.f32.mrf.mxu1 }
  0xac   :  { %v173_v25 = vadd.f32 %v383_v21, %v172_v23  ;;  %v217_v26 = vadd.f32 %v384_v22, %v216_v24 }
  0xae   :  { %v265_v27 = vmul.f32 0.35355338, %v173_v25  ;;  %v272_v28 = vpack.c.bf16 %v217_v26, %v217_v26 }
  0xb0   :  { %v267_v30 = vpack.c.bf16 %v265_v27, %v265_v27  ;;  %274 = vst.msk [vmem:[#allocation14] sm:$0xf] %vm269_vm1, %v272_v28 }
  0xb2   :  { %270 = vst.msk [vmem:[#allocation13] sm:$0xf] %vm269_vm1, %v267_v30  ;;  %v260_v31 = vpop.f32.mrf.mxu2 }
  0xb3   :  { %v261_v32 = vadd.f32 %v385_v29, %v260_v31  ;;  %v174_v33 = vpop.f32.mrf.mxu0  ;;  %v218_v34 = vpop.f32.mrf.mxu1 }
  0xb4   :  { %v175_v35 = vadd.f32 %v383_v21, %v174_v33  ;;  %v219_v36 = vadd.f32 %v384_v22, %v218_v34 }
  0xb5   :  { %v276_v37 = vpack.c.bf16 %v261_v32, %v261_v32 }
  0xb6   :  { %v266_v38 = vmul.f32 0.35355338, %v175_v35  ;;  %v273_v39 = vpack.c.bf16 %v219_v36, %v219_v36 }
  0xb7   :  { %278 = vst.msk [vmem:[#allocation16] sm:$0xf] %vm269_vm1, %v276_v37 }
  0xb8   :  { %v268_v40 = vpack.c.bf16 %v266_v38, %v266_v38  ;;  %275 = vst.msk [vmem:[#allocation14 + $0x4] sm:$0xf] %vm269_vm1, %v273_v39 }
  0xb9   :  { %305 = dma.vmem_to_hbm [thread:$0]  %s298_s6, 128, %s300_s15, [#allocation15], %s618_s29, %s618_s29, %s619_s30  }
  0xba   :  { %271 = vst.msk [vmem:[#allocation13 + $0x4] sm:$0xf] %vm269_vm1, %v268_v40  ;;  %v262_v41 = vpop.f32.mrf.mxu2 }
  0xbb   :  { %v263_v42 = vadd.f32 %v385_v29, %v262_v41  ;;  %292 = dma.vmem_to_hbm [thread:$0]  %s285_s8, 128, %s287_s19, [#allocation4], %s618_s29, %s618_s29, %s619_s30  }
  0xbd   :  { %v277_v43 = vpack.c.bf16 %v263_v42, %v263_v42 }
  0xbf   :  { %279 = vst.msk [vmem:[#allocation16 + $0x4] sm:$0xf] %vm269_vm1, %v277_v43 }
  0xc0   :  { %318 = dma.vmem_to_hbm [thread:$0]  %s311_s9, 128, %s313_s22, [#allocation15], %s618_s29, %s618_s29, %s619_s30  }
  0xc1   :  { %610 = dma.done.wait [#allocation4], 128  }
  0xc2   :  { %611 = vsyncadd [#allocation4], 4294967168 }
  0xc3   :  { %612 = dma.done.wait [#allocation15], 256  }
  0xc4   :  { %613 = vsyncadd [#allocation15], 4294967040 }
  0xc5   :  { %331 = vsyncpa [#allocation3], 1 }
  0xc6   :  { %332 = vsyncpa [#allocation6], 1 }
  0xc7   :  { %333 = vsyncpa [#allocation9], 1 }
  0xc8   :  { %334 = vsyncpa [#allocation12], 1 }
  0xc9   :  { %335 = vsyncpa [#allocation4], 1 }
  0xca   :  { %336 = vsyncpa [#allocation15], 1 }

</bundles_post_ra>
